<compile_context>
chip_gen: v7x
topology: tpu7x:2x2x1
jax: 0.10.0
libtpu: 0.0.40
codegen_flags: <defaults>
</compile_context>

<pallas_src>
import functools

import jax
import jax.numpy as jnp
from jax import lax
from jax.experimental import pallas as pl
from jax.experimental.pallas import tpu as pltpu

cfg = {"variance": [0.1, 0.2]}

LANE = 128


# ----------------------------- decode kernel --------------------------------
def _decode_kernel(loc_ref, prior_ref, out_ref, *, var0, var1):
    # loc_ref/out_ref: (1, 4, TS, 128); prior_ref: (4, TS, 128)
    # coordinate index 0..3 = cx, cy, w, h for inputs; x1, y1, x2, y2 for output.
    pcx = prior_ref[0]
    pcy = prior_ref[1]
    pw = prior_ref[2]
    ph = prior_ref[3]
    lcx = loc_ref[0, 0]
    lcy = loc_ref[0, 1]
    lw = loc_ref[0, 2]
    lh = loc_ref[0, 3]

    cx = pcx + lcx * var0 * pw
    cy = pcy + lcy * var0 * ph
    w = pw * jnp.exp(lw * var1)
    h = ph * jnp.exp(lh * var1)

    x1 = cx - 0.5 * w
    y1 = cy - 0.5 * h
    out_ref[0, 0] = x1
    out_ref[0, 1] = y1
    out_ref[0, 2] = x1 + w
    out_ref[0, 3] = y1 + h


def _pick_tile_s(S):
    # S is a multiple of 8; pick the largest TILE_S = 8*d (d | S//8, d <= 8).
    m = S // 8
    for d in range(min(m, 8), 0, -1):
        if m % d == 0:
            return 8 * d
    return 8


def decode_boxes(loc4, pri4, variance):
    """loc4 (B,4,S,128), pri4 (4,S,128) -> (B,4,S,128) corner boxes."""
    B, _, S, L = loc4.shape
    TS = _pick_tile_s(S)
    kernel = functools.partial(
        _decode_kernel, var0=float(variance[0]), var1=float(variance[1]))
    return pl.pallas_call(
        kernel,
        out_shape=jax.ShapeDtypeStruct((B, 4, S, L), jnp.float32),
        grid=(B, S // TS),
        in_specs=[pl.BlockSpec((1, 4, TS, L), lambda b, s: (b, 0, s, 0)),
                  pl.BlockSpec((4, TS, L), lambda b, s: (0, s, 0))],
        out_specs=pl.BlockSpec((1, 4, TS, L), lambda b, s: (b, 0, s, 0)),
        compiler_params=pltpu.CompilerParams(
            dimension_semantics=("parallel", "parallel")),
    )(loc4, pri4)


# ------------------------------- NMS kernel ---------------------------------
def _nms_kernel(boxes_ref, score_ref, out_ref, keep_ref, *,
                nms_thresh, conf_thresh):
    # boxes_ref : (1, 4, K, G)  coordinate rows x1,y1,x2,y2; K on sublanes,
    #                           G=(batch,class) tiles on the 128-lane axis.
    # score_ref : (1, K, G)     candidate scores (descending along K)
    # out_ref   : (1, 6, K, G)  rows = keep, score, x1, y1, x2, y2 (zeroed if dropped)
    # keep_ref  : (K, G)        VMEM scratch, greedy keep decisions.
    K = boxes_ref.shape[2]
    x1 = boxes_ref[0, 0]
    y1 = boxes_ref[0, 1]
    x2 = boxes_ref[0, 2]
    y2 = boxes_ref[0, 3]
    area = (x2 - x1) * (y2 - y1)                      # (K, G)

    keep_ref[...] = jnp.zeros_like(keep_ref)

    # Greedy NMS over score-descending candidates.  The pairwise "hit" test is
    # division-free (inter > thresh*union, no 0/0 NaN for degenerate boxes) and
    # the hit ROW for candidate i is built on the fly; because IoU is symmetric
    # the running suppression for row i is max_j hit_i[j] * keep[j], so the only
    # mutable state is the keep plane (single-row store per iteration).
    def body(i, carry):
        xi1 = boxes_ref[0, 0, pl.ds(i, 1), :]          # (1, G)
        yi1 = boxes_ref[0, 1, pl.ds(i, 1), :]
        xi2 = boxes_ref[0, 2, pl.ds(i, 1), :]
        yi2 = boxes_ref[0, 3, pl.ds(i, 1), :]
        si = score_ref[0, pl.ds(i, 1), :]              # (1, G)
        area_i = (xi2 - xi1) * (yi2 - yi1)

        xx1 = jnp.maximum(x1, xi1)                     # (K, G)
        yy1 = jnp.maximum(y1, yi1)
        xx2 = jnp.minimum(x2, xi2)
        yy2 = jnp.minimum(y2, yi2)
        iw = jnp.maximum(xx2 - xx1, 0.0)
        ih = jnp.maximum(yy2 - yy1, 0.0)
        inter = iw * ih
        union = area + area_i - inter
        hit_i = (inter > nms_thresh * union).astype(jnp.float32)   # (K, G)

        # keep row i is still 0 here, so the self-hit never suppresses i.
        sup_i = jnp.max(hit_i * keep_ref[...], axis=0, keepdims=True)   # (1, G)
        valid_i = (si > conf_thresh).astype(jnp.float32)
        keep_ref[pl.ds(i, 1), :] = valid_i * (1.0 - sup_i)
        return carry

    unroll = True if K <= 16 else 4
    lax.fori_loop(0, K, body, 0, unroll=unroll)

    keep = keep_ref[...]                               # (K, G)
    out_ref[0, 0] = keep
    out_ref[0, 1] = score_ref[0] * keep
    out_ref[0, 2] = x1 * keep
    out_ref[0, 3] = y1 * keep
    out_ref[0, 4] = x2 * keep
    out_ref[0, 5] = y2 * keep


def nms_grouped(boxes_in, scores_in, nms_thresh, conf_thresh):
    NG, _, K, G = boxes_in.shape
    kernel = functools.partial(_nms_kernel, nms_thresh=float(nms_thresh),
                               conf_thresh=float(conf_thresh))
    return pl.pallas_call(
        kernel,
        out_shape=jax.ShapeDtypeStruct((NG, 6, K, G), jnp.float32),
        grid=(NG,),
        in_specs=[pl.BlockSpec((1, 4, K, G), lambda n: (n, 0, 0, 0)),
                  pl.BlockSpec((1, K, G), lambda n: (n, 0, 0))],
        out_specs=pl.BlockSpec((1, 6, K, G), lambda n: (n, 0, 0, 0)),
        scratch_shapes=[pltpu.VMEM((K, G), jnp.float32)],
        compiler_params=pltpu.CompilerParams(dimension_semantics=("parallel",)),
    )(boxes_in, scores_in)


# ------------------------------- forward ------------------------------------
def detect_forward(loc_data, conf_data, prior_data, *, num_classes, top_k,
                   conf_thresh, nms_thresh, variance=(0.1, 0.2), group=128):
    """loc_data [B,P,4], conf_data [B*P,C], prior_data [P,4] -> [B,C,top_k,5]."""
    B, P, _ = loc_data.shape
    C, K = num_classes, top_k

    # ---- box decoding (Pallas, sublane-dense (4, S, 128) layout) ----
    P_pad = ((P + 8 * LANE - 1) // (8 * LANE)) * (8 * LANE)   # S multiple of 8
    S = P_pad // LANE
    loc_t = jnp.transpose(loc_data, (0, 2, 1)).astype(jnp.float32)     # [B,4,P]
    loc_t = jnp.pad(loc_t, ((0, 0), (0, 0), (0, P_pad - P)))
    loc4 = loc_t.reshape(B, 4, S, LANE)
    pri_t = jnp.transpose(prior_data, (1, 0)).astype(jnp.float32)      # [4,P]
    pri_t = jnp.pad(pri_t, ((0, 0), (0, P_pad - P)))
    pri4 = pri_t.reshape(4, S, LANE)
    boxes4 = decode_boxes(loc4, pri4, variance)                        # [B,4,S,128]
    boxes_t = boxes4.reshape(B, 4, P_pad)[:, :, :P]                    # [B,4,P]

    # ---- per-class top-K candidate selection (lax.top_k, no full sort) ----
    conf = conf_data.reshape(B, P, C).transpose(0, 2, 1).astype(jnp.float32)  # [B,C,P]
    cand_scores, order = lax.top_k(conf, K)                            # [B,C,K] desc

    # gather candidate boxes per batch (no B*C*4*P broadcast intermediate)
    # TODO(synk): further win would be fusing decode into this gathered-candidate
    # path via scalar-prefetched indices, removing the (B,4,P) HBM round trip.
    def gather_one(boxes_b, idx_b):                                    # (4,P), (C,K)
        return jnp.take(boxes_b, idx_b.reshape(-1), axis=1).reshape(4, C, K)
    cand = jax.vmap(gather_one)(boxes_t, order)                        # (B,4,C,K)

    # ---- pack (batch, class) tiles into lane-parallel groups of size G=128 ----
    N = B * C
    G = group
    Np = ((N + G - 1) // G) * G
    NG = Np // G

    boxes_n = jnp.transpose(cand, (0, 2, 1, 3)).reshape(N, 4, K)
    boxes_n = jnp.pad(boxes_n, ((0, Np - N), (0, 0), (0, 0)))
    boxes_in = jnp.transpose(boxes_n.reshape(NG, G, 4, K), (0, 2, 3, 1))   # (NG,4,K,G)

    scores_n = jnp.pad(cand_scores.reshape(N, K), ((0, Np - N), (0, 0)),
                       constant_values=-1e30)                              # padded tiles never kept
    scores_in = jnp.transpose(scores_n.reshape(NG, G, K), (0, 2, 1))       # (NG,K,G)

    # ---- grouped on-the-fly pairwise-IoU + greedy NMS (Pallas) ----
    out6 = nms_grouped(boxes_in, scores_in, nms_thresh, conf_thresh)       # (NG,6,K,G)
    out6 = jnp.transpose(out6, (0, 3, 2, 1)).reshape(Np, K, 6)[:N]
    out6 = out6.reshape(B, C, K, 6)

    keep = out6[..., 0]                      # [B,C,K]
    rows = out6[..., 1:6]                    # [B,C,K,5] (score, x1, y1, x2, y2)

    # Compact kept detections to the front (candidates are score-descending, so
    # the compacted order matches the reference `output[i, cl, :count]` fill).
    pos = jnp.arange(K)
    ckey = jnp.where(keep > 0, pos, pos + K)
    corder = jnp.argsort(ckey, axis=-1)
    rows = jnp.take_along_axis(rows, corder[..., None], axis=2)

    # Background class (index 0) is skipped by the reference loop.
    rows = rows.at[:, 0].set(0.0)

    # The reference's final rank<top_k `.fill_(0)` acts on a masked-select copy
    # (a no-op on `output`), so it is intentionally not applied here.
    return rows


if __name__ == "__main__":
    key = jax.random.PRNGKey(0)
    B, P, C, K = 2, 128, 4, 8
    conf_thresh, nms_thresh = 0.01, 0.5
    k1, k2, k3, k4 = jax.random.split(key, 4)

    loc_data = 0.5 * jax.random.normal(k1, (B, P, 4), dtype=jnp.float32)
    conf_data = jax.random.normal(k2, (B * P, C), dtype=jnp.float32)
    centers = jax.random.uniform(k3, (P, 2), minval=0.2, maxval=0.8)
    whs = jax.random.uniform(k4, (P, 2), minval=0.05, maxval=0.3)
    prior_data = jnp.concatenate([centers, whs], axis=1).astype(jnp.float32)  # [P,4]

    out = detect_forward(loc_data, conf_data, prior_data,
                         num_classes=C, top_k=K,
                         conf_thresh=conf_thresh, nms_thresh=nms_thresh,
                         variance=tuple(cfg["variance"]))
    out = jax.block_until_ready(out)

    assert out.shape == (B, C, K, 5), out.shape
    assert bool(jnp.all(jnp.isfinite(out)))
    print("KERNEL_OK")
</pallas_src>

<mosaic_0001>
module attributes {stable_mosaic.version = 11 : i64} {
  func.func @_decode_kernel(%arg0: i32, %arg1: i32, %arg2: memref<1x4x8x128xf32, #tpu.memory_space<vmem>>, %arg3: memref<4x8x128xf32, #tpu.memory_space<vmem>>, %arg4: memref<1x4x8x128xf32, #tpu.memory_space<vmem>>) attributes {dimension_semantics = [#tpu.dimension_semantics<parallel>, #tpu.dimension_semantics<parallel>], iteration_bounds = array<i64: 2, 1>, scalar_prefetch = 0 : i64, scratch_operands = 0 : i64, tpu.core_type = #tpu.core_type<tc>, window_params = [{transform_indices = @transform_0, window_bounds = array<i64: 1, 4, 8, 128>}, {transform_indices = @transform_1, window_bounds = array<i64: 4, 8, 128>}, {transform_indices = @transform_2, window_bounds = array<i64: 1, 4, 8, 128>}]} {
    %c0 = arith.constant 0 : index
    %c0_0 = arith.constant 0 : index
    %c0_1 = arith.constant 0 : index
    %0 = vector.load %arg3[%c0, %c0_0, %c0_1] : memref<4x8x128xf32, #tpu.memory_space<vmem>>, vector<1x8x128xf32>
    %1 = vector.shape_cast %0 : vector<1x8x128xf32> to vector<8x128xf32>
    %c1 = arith.constant 1 : index
    %c0_2 = arith.constant 0 : index
    %c0_3 = arith.constant 0 : index
    %2 = vector.load %arg3[%c1, %c0_2, %c0_3] : memref<4x8x128xf32, #tpu.memory_space<vmem>>, vector<1x8x128xf32>
    %3 = vector.shape_cast %2 : vector<1x8x128xf32> to vector<8x128xf32>
    %c2 = arith.constant 2 : index
    %c0_4 = arith.constant 0 : index
    %c0_5 = arith.constant 0 : index
    %4 = vector.load %arg3[%c2, %c0_4, %c0_5] : memref<4x8x128xf32, #tpu.memory_space<vmem>>, vector<1x8x128xf32>
    %5 = vector.shape_cast %4 : vector<1x8x128xf32> to vector<8x128xf32>
    %c3 = arith.constant 3 : index
    %c0_6 = arith.constant 0 : index
    %c0_7 = arith.constant 0 : index
    %6 = vector.load %arg3[%c3, %c0_6, %c0_7] : memref<4x8x128xf32, #tpu.memory_space<vmem>>, vector<1x8x128xf32>
    %7 = vector.shape_cast %6 : vector<1x8x128xf32> to vector<8x128xf32>
    %c0_8 = arith.constant 0 : index
    %c0_9 = arith.constant 0 : index
    %c0_10 = arith.constant 0 : index
    %c0_11 = arith.constant 0 : index
    %8 = vector.load %arg2[%c0_8, %c0_9, %c0_10, %c0_11] : memref<1x4x8x128xf32, #tpu.memory_space<vmem>>, vector<1x1x8x128xf32>
    %9 = vector.shape_cast %8 : vector<1x1x8x128xf32> to vector<8x128xf32>
    %c0_12 = arith.constant 0 : index
    %c1_13 = arith.constant 1 : index
    %c0_14 = arith.constant 0 : index
    %c0_15 = arith.constant 0 : index
    %10 = vector.load %arg2[%c0_12, %c1_13, %c0_14, %c0_15] : memref<1x4x8x128xf32, #tpu.memory_space<vmem>>, vector<1x1x8x128xf32>
    %11 = vector.shape_cast %10 : vector<1x1x8x128xf32> to vector<8x128xf32>
    %c0_16 = arith.constant 0 : index
    %c2_17 = arith.constant 2 : index
    %c0_18 = arith.constant 0 : index
    %c0_19 = arith.constant 0 : index
    %12 = vector.load %arg2[%c0_16, %c2_17, %c0_18, %c0_19] : memref<1x4x8x128xf32, #tpu.memory_space<vmem>>, vector<1x1x8x128xf32>
    %13 = vector.shape_cast %12 : vector<1x1x8x128xf32> to vector<8x128xf32>
    %c0_20 = arith.constant 0 : index
    %c3_21 = arith.constant 3 : index
    %c0_22 = arith.constant 0 : index
    %c0_23 = arith.constant 0 : index
    %14 = vector.load %arg2[%c0_20, %c3_21, %c0_22, %c0_23] : memref<1x4x8x128xf32, #tpu.memory_space<vmem>>, vector<1x1x8x128xf32>
    %15 = vector.shape_cast %14 : vector<1x1x8x128xf32> to vector<8x128xf32>
    %cst = arith.constant 1.000000e-01 : f32
    %16 = vector.broadcast %cst : f32 to vector<8x128xf32>
    %17 = arith.mulf %9, %16 : vector<8x128xf32>
    %18 = arith.mulf %17, %5 : vector<8x128xf32>
    %19 = arith.addf %1, %18 : vector<8x128xf32>
    %cst_24 = arith.constant 1.000000e-01 : f32
    %20 = vector.broadcast %cst_24 : f32 to vector<8x128xf32>
    %21 = arith.mulf %11, %20 : vector<8x128xf32>
    %22 = arith.mulf %21, %7 : vector<8x128xf32>
    %23 = arith.addf %3, %22 : vector<8x128xf32>
    %cst_25 = arith.constant 2.000000e-01 : f32
    %24 = vector.broadcast %cst_25 : f32 to vector<8x128xf32>
    %25 = arith.mulf %13, %24 : vector<8x128xf32>
    %26 = math.exp %25 : vector<8x128xf32>
    %27 = arith.mulf %5, %26 : vector<8x128xf32>
    %cst_26 = arith.constant 2.000000e-01 : f32
    %28 = vector.broadcast %cst_26 : f32 to vector<8x128xf32>
    %29 = arith.mulf %15, %28 : vector<8x128xf32>
    %30 = math.exp %29 : vector<8x128xf32>
    %31 = arith.mulf %7, %30 : vector<8x128xf32>
    %cst_27 = arith.constant 5.000000e-01 : f32
    %32 = vector.broadcast %cst_27 : f32 to vector<8x128xf32>
    %33 = arith.mulf %32, %27 : vector<8x128xf32>
    %34 = arith.subf %19, %33 : vector<8x128xf32>
    %cst_28 = arith.constant 5.000000e-01 : f32
    %35 = vector.broadcast %cst_28 : f32 to vector<8x128xf32>
    %36 = arith.mulf %35, %31 : vector<8x128xf32>
    %37 = arith.subf %23, %36 : vector<8x128xf32>
    %c0_29 = arith.constant 0 : index
    %c0_30 = arith.constant 0 : index
    %c0_31 = arith.constant 0 : index
    %c0_32 = arith.constant 0 : index
    %38 = vector.load %arg4[%c0_29, %c0_30, %c0_31, %c0_32] : memref<1x4x8x128xf32, #tpu.memory_space<vmem>>, vector<1x1x8x128xf32>
    %39 = vector.shape_cast %38 : vector<1x1x8x128xf32> to vector<8x128xf32>
    %40 = vector.shape_cast %34 : vector<8x128xf32> to vector<1x1x8x128xf32>
    tpu.vector_store %arg4[%c0_29, %c0_30, %c0_31, %c0_32], %40 {strides = array<i32>} : memref<1x4x8x128xf32, #tpu.memory_space<vmem>>, vector<1x1x8x128xf32>,
    %c0_33 = arith.constant 0 : index
    %c1_34 = arith.constant 1 : index
    %c0_35 = arith.constant 0 : index
    %c0_36 = arith.constant 0 : index
    %41 = vector.load %arg4[%c0_33, %c1_34, %c0_35, %c0_36] : memref<1x4x8x128xf32, #tpu.memory_space<vmem>>, vector<1x1x8x128xf32>
    %42 = vector.shape_cast %41 : vector<1x1x8x128xf32> to vector<8x128xf32>
    %43 = vector.shape_cast %37 : vector<8x128xf32> to vector<1x1x8x128xf32>
    tpu.vector_store %arg4[%c0_33, %c1_34, %c0_35, %c0_36], %43 {strides = array<i32>} : memref<1x4x8x128xf32, #tpu.memory_space<vmem>>, vector<1x1x8x128xf32>,
    %44 = arith.addf %34, %27 : vector<8x128xf32>
    %c0_37 = arith.constant 0 : index
    %c2_38 = arith.constant 2 : index
    %c0_39 = arith.constant 0 : index
    %c0_40 = arith.constant 0 : index
    %45 = vector.load %arg4[%c0_37, %c2_38, %c0_39, %c0_40] : memref<1x4x8x128xf32, #tpu.memory_space<vmem>>, vector<1x1x8x128xf32>
    %46 = vector.shape_cast %45 : vector<1x1x8x128xf32> to vector<8x128xf32>
    %47 = vector.shape_cast %44 : vector<8x128xf32> to vector<1x1x8x128xf32>
    tpu.vector_store %arg4[%c0_37, %c2_38, %c0_39, %c0_40], %47 {strides = array<i32>} : memref<1x4x8x128xf32, #tpu.memory_space<vmem>>, vector<1x1x8x128xf32>,
    %48 = arith.addf %37, %31 : vector<8x128xf32>
    %c0_41 = arith.constant 0 : index
    %c3_42 = arith.constant 3 : index
    %c0_43 = arith.constant 0 : index
    %c0_44 = arith.constant 0 : index
    %49 = vector.load %arg4[%c0_41, %c3_42, %c0_43, %c0_44] : memref<1x4x8x128xf32, #tpu.memory_space<vmem>>, vector<1x1x8x128xf32>
    %50 = vector.shape_cast %49 : vector<1x1x8x128xf32> to vector<8x128xf32>
    %51 = vector.shape_cast %48 : vector<8x128xf32> to vector<1x1x8x128xf32>
    tpu.vector_store %arg4[%c0_41, %c3_42, %c0_43, %c0_44], %51 {strides = array<i32>} : memref<1x4x8x128xf32, #tpu.memory_space<vmem>>, vector<1x1x8x128xf32>,
    return
  }
  func.func @transform_0(%arg0: i32, %arg1: i32) -> (i32, i32, i32, i32) {
    %c0_i32 = arith.constant 0 : i32
    %c0_i32_0 = arith.constant 0 : i32
    %c0_i32_1 = arith.constant 0 : i32
    return %arg0, %c0_i32, %arg1, %c0_i32_0 : i32, i32, i32, i32
  }
  func.func @transform_1(%arg0: i32, %arg1: i32) -> (i32, i32, i32) {
    %c0_i32 = arith.constant 0 : i32
    %c0_i32_0 = arith.constant 0 : i32
    %c0_i32_1 = arith.constant 0 : i32
    return %c0_i32, %arg1, %c0_i32_0 : i32, i32, i32
  }
  func.func @transform_2(%arg0: i32, %arg1: i32) -> (i32, i32, i32, i32) {
    %c0_i32 = arith.constant 0 : i32
    %c0_i32_0 = arith.constant 0 : i32
    %c0_i32_1 = arith.constant 0 : i32
    return %arg0, %c0_i32, %arg1, %c0_i32_0 : i32, i32, i32, i32
  }
}

</mosaic_0001>

<bundles_post_ra>
// kernel: tpu_custom_call.1
= control target key start
LH: loop header
LB: loop body
LE: loop exit
PB: predicated region body
PF: predicated region fallthrough
CT: control target
= control target key end

     0   :  { %7 = vsyncpa [#allocation3], 0  ;;  %s857_s0 = inlined_call_operand.hbm [shape: f32[2,4,8,128], index: 0, kind: input, shape index: {}]   ;;  %s858_s1 = inlined_call_operand.hbm [shape: f32[4,8,128], index: 1, kind: input, shape index: {}]   ;;  %s859_s2 = inlined_call_operand.hbm [shape: f32[2,4,8,128], index: 2, kind: output, shape index: {}]  }
   0x1   :  { %9 = vsyncpa [#allocation3 + $0x1], 0 }
   0x2   :  { %10 = vsyncpa [#allocation6], 0 }
   0x3   :  { %11 = vsyncpa [#allocation4], 0 }
   0x4   :  { %13 = vsyncpa [#allocation4 + $0x1], 0  ;;  %s628_s9 = smov 0   ;;  %s630_s10 = smov 0  }
   0x5   :  { %s632_s11 = smov 0   ;;  %s634_s12 = smov 0  }
   0x6   :  { %s636_s13 = smov 0   ;;  %s638_s14 = smov 0  }
   0x7 LB: > { %s354_s15 = sadd.s32 4294967295, %s604_s14   ;;  %s355_s16 = sadd.s32 4294967294, %s604_s14   ;;  %s604_s14 = sphi %s638_s14, %s19_s14   ;;  %s600_s13 = sphi %s636_s13, %s883_s13   ;;  %s596_s12 = sphi %s634_s12, %s882_s12   ;;  %s592_s11 = sphi %s632_s11, %s881_s11   ;;  %s588_s10 = sphi %s630_s10, %s880_s10   ;;  %s584_s9 = sphi %s628_s9, %s879_s9  }
   0x8   : > { %p53_p0 = scmp.ne.s32.totalorder %s588_s10, %s584_s9  ;;  %p662_p1 = scmp.eq.s32.totalorder %s354_s15, 0 }
   0x9   : > { %p666_p2 = scmp.eq.s32.totalorder %s354_s15, 1  ;;  %p111_p3 = scmp.eq.s32.totalorder %s355_s16, 1 }
   0xa   : > { %s864_s17 = scalar_select %p662_p1, 1, 0 }
   0xb   : > { %s865_s18 = scalar_select %p666_p2, 1, 0 }
   0xc   : > { %p672_p4 = por %p662_p1, %p53_p0  ;;  %p356_p5 = scmp.ge.s32.totalorder %s604_s14, 1 }
   0xd   : > { %p677_p6 = por %p111_p3, %p53_p0  ;;  %p118_p7 = scmp.lt.s32.totalorder %s604_s14, 3 }
   0xe   : > { %s866_s19 = scalar_select %p672_p4, 1, 0 }
   0xf   : > { %s867_s20 = scalar_select %p677_p6, 1, 0 }
  0x10   : > { %p682_p8 = pnand %p356_p5, %p118_p7  ;;  %s606_s22 = smov [#allocation5]  }
  0x11   : > { %s132_s23 = sshll.u32 %s606_s22, 4  ;;  %s31_s25 = sadd.s32 1, %s600_s13  ;;  %s133_s23 = int_to_ptr.vmem [resolvable:$true] %s132_s23 }
  0x12   : > { %s868_s21 = scalar_select %p682_p8, 1, 0 }
  0x13   : > { %p387_p9 = pneg %p682_p8  ;;  %s460_s28 = scalar_lea.hbm %s858_s1, 512 }
  0x14   : > { %p461_p12 = scmp.ne.s32.totalorder %s858_s1, %s460_s28  ;;  %p467_p5 = scmp.lt.u32.totalorder %s460_s28, %s858_s1 }
  0x15   : > { %p691_p11 = pnand %p387_p9, %p662_p1 }
  0x17   : > { %p462_p13 = pneg %p691_p11 }
  0x19   : > { %p463_p0 = pnand %p462_p13, %p461_p12 }
  0x1b   : > { %p464_p3 = pneg %p463_p0 }
  0x1d   : > { %p469_p7 = pnand %p467_p5, %p464_p3 }
  0x1f   : > { %472 = shalt.err (!%p469_p7)
}
  0x20   : > { %s473_s5 = scalar_lea.vmem %s133_s23, 512  ;;  %p481_p1 = scmp.lt.s32.totalorder %s133_s23, %s133_s23 }
  0x21   : > { %p474_p9 = scmp.ne.s32.totalorder %s133_s23, %s473_s5  ;;  %p482_p4 = scmp.lt.s32.totalorder %s473_s5, %s473_s5 }
  0x23   : > { %p476_p10 = pnand %p474_p9, %p462_p13  ;;  %p483_p8 = por %p482_p4, %p481_p1 }
  0x25   : > { %p477_p6 = pneg %p476_p10 }
  0x27   : > { %p484_p2 = pnand %p483_p8, %p477_p6 }
  0x29   : > { %487 = shalt.err (!%p484_p2)
}
  0x2a   : > { %s607_s6 = smov 128   ;;  %s608_s7 = smov 8  }
  0x2b   : > { %390 = dma.hbm_to_vmem [thread:$0]  (!%p691_p11), %s858_s1, 512, %s133_s23, [#allocation6], %s607_s6, %s607_s6, %s608_s7  }
  0x2c   : > { %p33_p1 = scmp.ge.s32.totalorder %s31_s25, 2  ;;  %s40_s16 = sadd.s32 1, %s592_s11 }
  0x2d   : > { %p47_p2 = scmp.ne.s32.totalorder %s592_s11, %s588_s10  ;;  %p48_p4 = scmp.eq.s32.totalorder %s604_s14, 0 }
  0x2e   : > { %s885_s25 = smov (%p33_p1, %s31_s25), 0  ;;  %p871_p8 = scmp.ne.s32.totalorder %s865_s18, 0 }
  0x2f   : > { %p721_p6 = por %p48_p4, %p47_p2  ;;  %s35_s26 = ssub.s32 %s600_s13, %s885_s25 }
  0x30   : > { %p727_p10 = por %p871_p8, %p47_p2  ;;  %p400_p12 = scmp.lt.s32.totalorder %s604_s14, 2 }
  0x31   : > { %p38_p11 = scmp.eq.s32.totalorder %s35_s26, 0  ;;  %s146_s23 = sand.u32 1, %s592_s11  }
  0x32   : > { %s359_s27 = sshll.u32 %s146_s23, 5  ;;  %s377_s29 = sshll.u32 %s600_s13, 9 }
  0x33   : > { %s736_s28 = scalar_select %p38_p11, %s592_s11, %s40_s16  }
  0x34   : > { %s742_s4 = scalar_lea.hbm %s857_s0, %s377_s29  ;;  %s150_s18 = scalar_lea.vmem [#allocation2], %s359_s27 }
  0x35   : > { %s158_s5 = sshll.u32 %s150_s18, 4  ;;  %p748_p13 = pnand %p400_p12, %p721_p6  ;;  %s744_s5 = int_to_ptr.vmem [resolvable:$true] %s158_s5 }
  0x36   : > { %s752_s15 = scalar_lea.sflag [#allocation3], %s146_s23  ;;  %s488_s16 = scalar_lea.hbm %s742_s4, 512 }
  0x37   : > { %p489_p0 = scmp.ne.s32.totalorder %s742_s4, %s488_s16  ;;  %p490_p3 = pneg %p748_p13 }
  0x38   : > { %s493_s22 = scalar_lea.hbm %s857_s0, 1024  ;;  %p494_p9 = scmp.lt.u32.totalorder %s742_s4, %s857_s0 }
  0x39   : > { %p491_p5 = pnand %p490_p3, %p489_p0  ;;  %p495_p1 = scmp.lt.u32.totalorder %s493_s22, %s488_s16 }
  0x3a   : > { %p497_p4 = scmp.lt.u32.totalorder %s488_s16, %s742_s4 }
  0x3b   : > { %p492_p7 = pneg %p491_p5  ;;  %p496_p2 = por %p495_p1, %p494_p9 }
  0x3d   : > { %p498_p6 = por %p497_p4, %p496_p2 }
  0x3f   : > { %p499_p8 = pnand %p498_p6, %p492_p7 }
  0x41   : > { %502 = shalt.err (!%p499_p8)
}
  0x42   : > { %s503_s23 = scalar_lea.vmem %s744_s5, 512  ;;  %s609_s3 = smov [#allocation2]  }
  0x43   : > { %p504_p12 = scmp.ne.s32.totalorder %s744_s5, %s503_s23  ;;  %s508_s18 = sshll.u32 %s609_s3, 4  ;;  %s509_s18 = int_to_ptr.vmem [resolvable:$false] %s508_s18 }
  0x44   : > { %s510_s26 = scalar_lea.vmem %s509_s18, 1024  ;;  %p511_p5 = scmp.lt.s32.totalorder %s744_s5, %s509_s18 }
  0x45   : > { %p506_p11 = pnand %p504_p12, %p490_p3  ;;  %p512_p9 = scmp.lt.s32.totalorder %s510_s26, %s503_s23 }
  0x47   : > { %p507_p0 = pneg %p506_p11  ;;  %p513_p1 = por %p512_p9, %p511_p5 }
  0x49   : > { %p514_p2 = pnand %p513_p1, %p507_p0 }
  0x4b   : > { %517 = shalt.err (!%p514_p2)
}
  0x4c   : > { %394 = dma.hbm_to_vmem [thread:$0]  (!%p748_p13), %s742_s4, 512, %s744_s5, %s752_s15, %s607_s6, %s607_s6, %s608_s7  }
  0x4d   : > { %p874_p3 = scmp.ne.s32.totalorder %s868_s21, 0 }
  0x4e   : > { %s786_s16 = sand.u32 (!%p874_p3), 1, %s588_s10   ;;  %p875_p7 = scmp.ne.s32.totalorder (!%p874_p3), %s866_s19, 0 }
  0x4f   : > { %170 = sbr.rel (%p874_p3) target bundleno = 130 (0x82), region = 28  ;;  %s363_s27 = sshll.u32 (!%p874_p3), %s786_s16, 5 }
  0x50   : > { %s173_s22 = scalar_lea.sflag (!%p874_p3), [#allocation3], %s786_s16  ;;  %s176_s8 = scalar_lea.vmem (!%p874_p3), [#allocation2], %s363_s27 }
  0x56   : > { %571 = dma.done.wait (%p875_p7), %s173_s22, 512  }
  0x57   : > { %573 = vsyncadd (%p875_p7), %s173_s22, 4294966784  ;;  %p876_p13 = scmp.ne.s32.totalorder %s864_s17, 0 }
  0x59   : > { %575 = dma.done.wait (%p876_p13), [#allocation6], 512  }
  0x5a   : > { %577 = vsyncadd (%p876_p13), [#allocation6], 4294966784  ;;  %v367_v0 = vld [vmem:[%s176_s8 + $0x10] sm:$0xff]  ;;  %v368_v2 = vld [vmem:[%s176_s8 + $0x18] sm:$0xff]  ;;  %s200_s17 = scalar_lea.vmem [#allocation7], %s363_s27  ;;  %s378_s21 = sshll.u32 %s596_s12, 9 }
  0x5b   : > { %v221_v1 = vmul.f32 0.2, %v367_v0  ;;  %v225_v3 = vmul.f32 0.2, %v368_v2  ;;  %v208_v6 = vld [vmem:[%s176_s8] sm:$0xff]  ;;  %v366_v7 = vld [vmem:[%s176_s8 + $0x8] sm:$0xff]  ;;  %s808_s4 = scalar_lea.hbm %s859_s2, %s378_s21 }
  0x5c   : > { %v215_v8 = vmul.f32 0.1, %v208_v6  ;;  %v205_v9 = vld [vmem:[#allocation5 + $0x10] sm:$0xff]  ;;  %v218_v10 = vmul.f32 0.1, %v366_v7  ;;  %v207_v11 = vld [vmem:[#allocation5 + $0x18] sm:$0xff] }
  0x5d   : > { %v222_v4 = vmul.f32 1.442695, %v221_v1  ;;  %v226_v5 = vmul.f32 1.442695, %v225_v3  ;;  %v201_v13 = vld [vmem:[#allocation5] sm:$0xff]  ;;  %v203_v15 = vld [vmem:[#allocation5 + $0x8] sm:$0xff] }
  0x5e   : > { %v216_v12 = vmul.f32 %v215_v8, %v205_v9  ;;  %v219_v14 = vmul.f32 %v218_v10, %v207_v11  ;;  %s257_s19 = sshll.u32 %s200_s17, 4  ;;  %s243_s5 = scalar_lea.sflag [#allocation4], %s786_s16  ;;  %s803_s19 = int_to_ptr.vmem [resolvable:$true] %s257_s19 }
  0x5f   : > { %456 = vpow2.f32 %v222_v4  ;;  %s518_s12 = scalar_lea.vmem %s803_s19, 512  ;;  %s610_s15 = smov [#allocation7]  }
  0x60   : > { %458 = vpow2.f32 %v226_v5  ;;  %v217_v18 = vadd.f32 %v216_v12, %v201_v13  ;;  %v220_v20 = vadd.f32 %v219_v14, %v203_v15  ;;  %p519_p4 = scmp.ne.s32.totalorder %s803_s19, %s518_s12  ;;  %s522_s29 = sshll.u32 %s610_s15, 4  ;;  %s523_s29 = int_to_ptr.vmem [resolvable:$false] %s522_s29 }
  0x61   : > { %s524_s30 = scalar_lea.vmem %s523_s29, 1024  ;;  %p525_p12 = scmp.lt.s32.totalorder %s803_s19, %s523_s29 }
  0x62   : > { %p520_p6 = pnand %p519_p4, %p727_p10  ;;  %p526_p11 = scmp.lt.s32.totalorder %s524_s30, %s518_s12 }
  0x64   : > { %p521_p8 = pneg %p520_p6  ;;  %p527_p0 = por %p526_p11, %p525_p12 }
  0x66   : > { %p528_p5 = pnand %p527_p0, %p521_p8 }
  0x69   : > { %v457_v16 = vpop.eup %456 }
  0x6a   : > { %v459_v17 = vpop.eup %458  ;;  %v224_v19 = vmul.f32 %v457_v16, %v205_v9 }
  0x6b   : > { %v228_v21 = vmul.f32 %v459_v17, %v207_v11 }
  0x6c   : > { %v229_v22 = vmul.f32 0.5, %v224_v19 }
  0x6d   : > { %v231_v23 = vmul.f32 0.5, %v228_v21 }
  0x6e   : > { %v230_v24 = vsub.f32 %v217_v18, %v229_v22 }
  0x6f   : > { %v232_v25 = vsub.f32 %v220_v20, %v231_v23 }
  0x70   : > { %233 = vst [vmem:[%s200_s17] sm:$0xff] %v230_v24  ;;  %v236_v26 = vadd.f32 %v230_v24, %v224_v19 }
  0x71   : > { %369 = vst [vmem:[%s200_s17 + $0x8] sm:$0xff] %v232_v25  ;;  %v239_v27 = vadd.f32 %v232_v25, %v228_v21 }
  0x72   : > { %370 = vst [vmem:[%s200_s17 + $0x10] sm:$0xff] %v236_v26 }
  0x73   : > { %371 = vst [vmem:[%s200_s17 + $0x18] sm:$0xff] %v239_v27 }
  0x74   : > { %531 = shalt.err (!%p528_p5)
}
  0x75   : > { %s532_s23 = scalar_lea.hbm %s808_s4, 512  ;;  %s536_s26 = scalar_lea.hbm %s859_s2, 1024 }
  0x76   : > { %p533_p9 = scmp.ne.s32.totalorder %s808_s4, %s532_s23  ;;  %p537_p3 = scmp.lt.u32.totalorder %s808_s4, %s859_s2 }
  0x77   : > { %p538_p7 = scmp.lt.u32.totalorder %s536_s26, %s532_s23  ;;  %p540_p4 = scmp.lt.u32.totalorder %s532_s23, %s808_s4 }
  0x78   : > { %p534_p1 = pnand %p533_p9, %p727_p10 }
  0x79   : > { %p539_p13 = por %p538_p7, %p537_p3 }
  0x7a   : > { %p535_p2 = pneg %p534_p1 }
  0x7b   : > { %p541_p6 = por %p540_p4, %p539_p13 }
  0x7d   : > { %p542_p8 = pnand %p541_p6, %p535_p2 }
  0x7f   : > { %545 = shalt.err (!%p542_p8)
}
  0x80   : > { %s611_s8 = smov 128   ;;  %s612_s17 = smov 8  }
  0x81   : > { %385 = dma.vmem_to_hbm [thread:$0]  (%p727_p10), %s803_s19, 512, %s808_s4, %s243_s5, %s611_s8, %s611_s8, %s612_s17  }
  0x82 PF: > { %s272_s21 = sand.u32 1, %s584_s9   ;;  %p877_p12 = scmp.ne.s32.totalorder %s867_s20, 0 }
  0x83   : > { %p878_p11 = scmp.ge.s32.totalorder %s604_s14, 2  ;;  %s273_s6 = scalar_lea.sflag [#allocation4], %s272_s21 }
  0x85   : > { %p396_p0 = pnand %p878_p11, %p877_p12 }
  0x87   : > { %579 = dma.done.wait (!%p396_p0), %s273_s6, 512  }
  0x88   : > { %581 = vsyncadd (!%p396_p0), %s273_s6, 4294966784  ;;  %s19_s14 = sadd.s32 1, %s604_s14   ;;  %s879_s9 = smov %s588_s10 }
  0x89   : > { %p16_p5 = scmp.ge.s32.totalorder %s19_s14, 4   ;;  %s880_s10 = smov %s592_s11 }
  0x8a   : > { %s881_s11 = smov %s736_s28  ;;  %s882_s12 = smov %s600_s13 }
  0x8b   : > { %s883_s13 = smov %s885_s25  ;;  %18 = sbr.rel (!%p16_p5) target bundleno = 7 (0x7), region = 87 }
  0x92   :  { %278 = vsyncpa [#allocation3], 1 }
  0x93   :  { %280 = vsyncpa [#allocation3 + $0x1], 1 }
  0x94   :  { %281 = vsyncpa [#allocation6], 1 }
  0x95   :  { %282 = vsyncpa [#allocation4], 1 }
  0x96   :  { %284 = vsyncpa [#allocation4 + $0x1], 1 }

</bundles_post_ra>
